<compile_context>
chip_gen: v7x
topology: tpu7x:2x2x1
jax: 0.10.0
libtpu: 0.0.40
codegen_flags: <defaults>
</compile_context>

<pallas_src>
import functools

import numpy as np

import jax
import jax.numpy as jnp
from jax.experimental import pallas as pl
from jax.experimental.pallas import tpu as pltpu

_MiB = 1 << 20
# HIGHEST keeps the one-hot gather bit-exact for f32 inputs (a single-pass
# bf16 MXU lowering would truncate mantissas); for bf16 inputs it is a no-op.
_PRECISION = jax.lax.Precision.HIGHEST


# ---------------------------------------------------------------------------
# Host-side helpers (static shape / index math, matching PyTorch 'nearest').
# ---------------------------------------------------------------------------
def _resolve_geometry(h_in, w_in, size, scale):
    """Output size + scale handling, mirroring F.interpolate(mode='nearest')."""
    if size is not None:
        if isinstance(size, int):
            h_out, w_out = size, size
        else:
            h_out, w_out = int(size[0]), int(size[1])
        scale_h = scale_w = None
    else:
        if isinstance(scale, (int, float)):
            scale_h = scale_w = float(scale)
        else:
            scale_h, scale_w = float(scale[0]), float(scale[1])
        # PyTorch computes the output size with float math + floor.
        h_out = int(np.floor(np.float32(h_in) * np.float32(scale_h)))
        w_out = int(np.floor(np.float32(w_in) * np.float32(scale_w)))
    return h_out, w_out, scale_h, scale_w


def _nearest_indices(out_size, in_size, scale):
    """src = min(floor(dst * ratio), in_size - 1); ratio = 1/scale when a
    scale_factor is given, else in/out (ATen floorf path, float32 math)."""
    if scale is not None:
        ratio = np.float32(1.0 / float(scale))
    else:
        ratio = np.float32(in_size) / np.float32(out_size)
    dst = np.arange(out_size, dtype=np.float32)
    src = np.floor(dst * ratio).astype(np.int64)
    return np.clip(src, 0, in_size - 1)


def _gather_matrix_np(idx, in_size):
    """(in_size, len(idx)) one-hot matrix: column j selects row idx[j]."""
    g = np.zeros((in_size, len(idx)), dtype=np.float32)
    g[idx, np.arange(len(idx))] = 1.0
    return g


def _sublane(itemsize):
    return {4: 8, 2: 16, 1: 32}.get(int(itemsize), 8)


def _vmem_budget():
    """(per-step block budget, vmem_limit cap) adapted to the TPU generation."""
    try:
        cap = int(getattr(pltpu.get_tpu_info(), "vmem_capacity_bytes", 0) or 0)
    except Exception:
        cap = 0
    if cap >= 100 * _MiB:              # v5e / v6e: 128 MiB VMEM -> big tiles
        return 40 * _MiB, 96 * _MiB
    # v7x (64 MiB per TensorCore) or unknown: stay conservative.
    return 20 * _MiB, 48 * _MiB


def _pick_row_block(total_rows, per_row_bytes_2buf, resident_bytes, sublane,
                    budget):
    """Rows per grid step: fill the VMEM budget (minus resident gather-matrix
    bytes), keep >=2 grid steps when possible (v7x megacore), align to the
    dtype sublane tile.  Ragged last block is handled by pl.cdiv."""
    avail = max(budget - resident_bytes, per_row_bytes_2buf * sublane)
    blk = max(1, avail // per_row_bytes_2buf)
    if total_rows >= 2 * sublane:
        blk = min(blk, -(-total_rows // 2))          # guarantee >= 2 steps
    if blk >= total_rows:
        return int(total_rows)                       # full-dim block is legal
    return int(max(sublane, (blk // sublane) * sublane))


def _pick_item_block(n_items, per_item_bytes, resident_bytes, budget):
    avail = max(budget - resident_bytes, per_item_bytes)
    blk = max(1, avail // per_item_bytes)
    if n_items >= 2:
        blk = min(blk, -(-n_items // 2))             # guarantee >= 2 steps
    return int(min(blk, n_items))


def _pick_pack_factor(h_in, w_in, s_h, w_out, itemsize,
                      target_cols=256, g_cap_bytes=2 * _MiB):
    """Pack k consecutive input H-rows per slab row so the matmul output width
    reaches >=256 lanes (unmasked stores, full MXU columns) while the
    block-diagonal gather matrix stays small."""
    best = 1
    for k in range(1, h_in + 1):
        if h_in % k:
            continue
        if k > 1 and (k * w_in) * (k * s_h * w_out) * itemsize > g_cap_bytes:
            break
        best = k
        if k * s_h * w_out >= target_cols:
            break
    return best


# ---------------------------------------------------------------------------
# Kernels.
# ---------------------------------------------------------------------------
def _row_gather_kernel(x_ref, g_ref, o_ref):
    # x_ref: (BLK_ROWS, IN_COLS); g_ref: (IN_COLS, OUT_COLS) one-hot columns.
    o_ref[...] = jnp.dot(
        x_ref[...], g_ref[...],
        precision=_PRECISION, preferred_element_type=jnp.float32,
    ).astype(o_ref.dtype)


def _separable_gather_kernel(x_ref, gw_ref, gh_ref, o_ref):
    # x: (b, H_in, W_in); gw: (W_in, W_out) one-hot cols; gh: (H_out, H_in)
    # one-hot rows.  Two small exact matmuls instead of a fused (HW x HW) one.
    x = x_ref[...]
    tmp = jax.lax.dot_general(
        x, gw_ref[...],
        dimension_numbers=(((2,), (0,)), ((), ())),
        precision=_PRECISION, preferred_element_type=jnp.float32,
    ).astype(x.dtype)                                  # exact one-hot copy
    gh = jnp.broadcast_to(gh_ref[...], (x.shape[0],) + gh_ref.shape)
    out = jax.lax.dot_general(
        gh, tmp,
        dimension_numbers=(((2,), (1,)), ((0,), (0,))),
        precision=_PRECISION, preferred_element_type=jnp.float32,
    )                                                  # (b, H_out, W_out)
    o_ref[...] = out.astype(o_ref.dtype)


# ---------------------------------------------------------------------------
# pallas_call wrappers.
# ---------------------------------------------------------------------------
def _resize_rows_onehot(x2d, g_np, out_cols, out_dtype):
    rows, in_cols = x2d.shape
    in_isz = x2d.dtype.itemsize
    out_isz = np.dtype(out_dtype).itemsize
    g = jnp.asarray(g_np, dtype=x2d.dtype)
    g_bytes = int(g.size) * in_isz

    budget, limit_cap = _vmem_budget()
    # Grid-invariant gather matrix: keep it single-buffered when it is big
    # enough to matter (halves its VMEM footprint); default pipelining else.
    g_single = g_bytes > 4 * _MiB
    g_resident = g_bytes * (1 if g_single else 2)

    sub = max(_sublane(in_isz), _sublane(out_isz))
    per_row = 2 * (in_cols * in_isz + out_cols * out_isz)   # double-buffered
    blk_rows = _pick_row_block(rows, per_row, g_resident, sub, budget)

    est = per_row * blk_rows + g_resident
    vmem_limit = int(min(limit_cap, max(32 * _MiB, int(1.5 * est) + 2 * _MiB)))

    if g_single:
        g_spec = pl.BlockSpec((in_cols, out_cols), lambda i: (0, 0),
                              pipeline_mode=pl.Buffered(1))
    else:
        g_spec = pl.BlockSpec((in_cols, out_cols), lambda i: (0, 0))

    cost = pl.CostEstimate(
        flops=int(2 * rows * in_cols * out_cols),
        transcendentals=0,
        bytes_accessed=int(rows * in_cols * in_isz
                           + rows * out_cols * out_isz + g_bytes),
    )

    return pl.pallas_call(
        _row_gather_kernel,
        out_shape=jax.ShapeDtypeStruct((rows, out_cols), out_dtype),
        grid_spec=pltpu.PrefetchScalarGridSpec(
            num_scalar_prefetch=0,
            grid=(pl.cdiv(rows, blk_rows),),
            in_specs=[
                pl.BlockSpec((blk_rows, in_cols), lambda i: (i, 0)),
                g_spec,
            ],
            out_specs=pl.BlockSpec((blk_rows, out_cols), lambda i: (i, 0)),
        ),
        compiler_params=pltpu.CompilerParams(
            dimension_semantics=("parallel",),
            vmem_limit_bytes=vmem_limit,
        ),
        cost_estimate=cost,
    )(x2d, g)


def _resize_separable(x3d, gw_np, gh_np, h_out, w_out, out_dtype):
    nc, h_in, w_in = x3d.shape
    in_isz = x3d.dtype.itemsize
    out_isz = np.dtype(out_dtype).itemsize
    gw = jnp.asarray(gw_np, dtype=x3d.dtype)           # (W_in, W_out)
    gh = jnp.asarray(gh_np, dtype=x3d.dtype)           # (H_out, H_in)
    g_bytes = (int(gw.size) + int(gh.size)) * in_isz

    budget, limit_cap = _vmem_budget()
    # Per image: double-buffered in/out blocks + the in-kernel intermediates
    # (W-gathered rows in f32 + input dtype, broadcast H gather matrix).
    per_item = (2 * (h_in * w_in * in_isz + h_out * w_out * out_isz)
                + h_in * w_out * (4 + in_isz) + h_out * h_in * in_isz)
    nc_blk = _pick_item_block(nc, per_item, 2 * g_bytes, budget)

    est = per_item * nc_blk + 2 * g_bytes
    vmem_limit = int(min(limit_cap, max(32 * _MiB, int(1.5 * est) + 2 * _MiB)))

    cost = pl.CostEstimate(
        flops=int(2 * nc * (h_in * w_in * w_out + h_out * h_in * w_out)),
        transcendentals=0,
        bytes_accessed=int(nc * h_in * w_in * in_isz
                           + nc * h_out * w_out * out_isz + g_bytes),
    )

    return pl.pallas_call(
        _separable_gather_kernel,
        out_shape=jax.ShapeDtypeStruct((nc, h_out, w_out), out_dtype),
        grid_spec=pltpu.PrefetchScalarGridSpec(
            num_scalar_prefetch=0,
            grid=(pl.cdiv(nc, nc_blk),),
            in_specs=[
                pl.BlockSpec((nc_blk, h_in, w_in), lambda i: (i, 0, 0)),
                pl.BlockSpec((w_in, w_out), lambda i: (0, 0)),
                pl.BlockSpec((h_out, h_in), lambda i: (0, 0)),
            ],
            out_specs=pl.BlockSpec((nc_blk, h_out, w_out), lambda i: (i, 0, 0)),
        ),
        compiler_params=pltpu.CompilerParams(
            dimension_semantics=("parallel",),
            vmem_limit_bytes=vmem_limit,
        ),
        cost_estimate=cost,
    )(x3d, gw, gh)


# ---------------------------------------------------------------------------
# Public wrapper: Interpolate(size, scale, mode='nearest').forward(x), NCHW.
# ---------------------------------------------------------------------------
@functools.partial(jax.jit, static_argnames=("size", "scale", "mode"))
def interpolate(x, *, size=None, scale=None, mode="nearest"):
    assert mode == "nearest", "only mode='nearest' is implemented"
    assert (size is None) != (scale is None)
    n, c, h_in, w_in = x.shape

    h_out, w_out, scale_h, scale_w = _resolve_geometry(h_in, w_in, size, scale)
    idx_h = _nearest_indices(h_out, h_in, scale_h)
    idx_w = _nearest_indices(w_out, w_in, scale_w)

    # One-hot gather matrices stay exact in low precision; keep bf16 inputs in
    # bf16 so the MXU runs at native rate.
    if x.dtype in (jnp.bfloat16, jnp.float32):
        g_dtype = x.dtype
    else:
        g_dtype = jnp.float32
    xk = x if x.dtype == g_dtype else x.astype(g_dtype)
    nc = n * c

    # Fast path: H mapping is a pure integer repeat (integer scale-factor
    # upsampling such as scale=2, and the identity case).
    s_h = h_out // h_in if (h_out >= h_in and h_out % h_in == 0) else 0
    h_is_repeat = s_h >= 1 and bool(
        np.array_equal(idx_h, np.arange(h_out) // s_h))

    if h_is_repeat:
        gw = _gather_matrix_np(idx_w, w_in)              # (W_in, W_out)
        gw_rep = np.tile(gw, (1, s_h))                   # (W_in, s_h*W_out)
        # Pack k consecutive input rows per slab row (block-diagonal, exact)
        # so the output width is lane-dense even for small W.
        k = _pick_pack_factor(h_in, w_in, s_h, w_out,
                              np.dtype(g_dtype).itemsize)
        if k > 1:
            g_np = np.zeros((k * w_in, k * s_h * w_out), dtype=np.float32)
            for j in range(k):
                g_np[j * w_in:(j + 1) * w_in,
                     j * s_h * w_out:(j + 1) * s_h * w_out] = gw_rep
        else:
            g_np = gw_rep
        x2d = xk.reshape(nc * h_in // k, k * w_in)       # free reshape
        out2d = _resize_rows_onehot(x2d, g_np, k * s_h * w_out, x.dtype)
        # row-major (nc*H_in/k, k*s_h*W_out) == (n, c, H_out, W_out): free.
        return out2d.reshape(n, c, h_out, w_out)

    # General path (downsample / fractional scale / explicit size): separable
    # one-hot gathers -- (W_in,W_out) matmul then batched (H_out,H_in) matmul.
    gw_np = _gather_matrix_np(idx_w, w_in)               # (W_in, W_out)
    gh_np = _gather_matrix_np(idx_h, h_in).T             # (H_out, H_in)
    x3d = xk.reshape(nc, h_in, w_in)                     # free reshape
    out3d = _resize_separable(x3d, gw_np, gh_np, h_out, w_out, x.dtype)
    return out3d.reshape(n, c, h_out, w_out)


# ---------------------------------------------------------------------------
# Pure-JAX reference (same PyTorch index formula) for verification.
# ---------------------------------------------------------------------------
def _reference_nearest(x, *, size=None, scale=None):
    _, _, h_in, w_in = x.shape
    h_out, w_out, sh, sw = _resolve_geometry(h_in, w_in, size, scale)
    idx_h = _nearest_indices(h_out, h_in, sh)
    idx_w = _nearest_indices(w_out, w_in, sw)
    return x[:, :, idx_h, :][:, :, :, idx_w]


if __name__ == "__main__":
    key = jax.random.PRNGKey(0)
    # Module instance: Interpolate(scale=2, mode='nearest'), NCHW input.
    x = jax.random.normal(key, (2, 4, 16, 16), dtype=jnp.float32)

    # Fast path: integer scale-factor upsample (typical module config), f32.
    out = jax.block_until_ready(interpolate(x, scale=2, mode="nearest"))
    ref = _reference_nearest(x, scale=2)
    assert out.shape == (2, 4, 32, 32), out.shape
    assert bool(jnp.all(out == ref)), "mismatch vs reference (scale=2, f32)"

    # Fast path in bf16 (native-rate MXU; nearest stays exact).
    xb = x.astype(jnp.bfloat16)
    outb = jax.block_until_ready(interpolate(xb, scale=2, mode="nearest"))
    refb = _reference_nearest(xb, scale=2)
    assert outb.dtype == jnp.bfloat16
    assert bool(jnp.all(outb == refb)), "mismatch vs reference (scale=2, bf16)"

    # General path: explicit output size with non-integer ratios (down + up).
    out2 = jax.block_until_ready(interpolate(x, size=(8, 24), mode="nearest"))
    ref2 = _reference_nearest(x, size=(8, 24))
    assert out2.shape == (2, 4, 8, 24), out2.shape
    assert bool(jnp.all(out2 == ref2)), "mismatch vs reference (size=(8,24))"

    print("KERNEL_OK")
</pallas_src>

<mosaic_0001>
module attributes {stable_mosaic.version = 11 : i64} {
  func.func @_row_gather_kernel(%arg0: i32, %arg1: memref<16x64xf32, #tpu.memory_space<vmem>>, %arg2: memref<64x256xf32, #tpu.memory_space<vmem>>, %arg3: memref<16x256xf32, #tpu.memory_space<vmem>>) attributes {dimension_semantics = [#tpu.dimension_semantics<parallel>], iteration_bounds = array<i64: 2>, scalar_prefetch = 0 : i64, scratch_operands = 0 : i64, tpu.core_type = #tpu.core_type<tc>, window_params = [{transform_indices = @transform_0, window_bounds = array<i64: 16, 64>}, {pipeline_mode = #tpu.pipeline_mode<synchronous>, transform_indices = @transform_1, window_bounds = array<i64: 64, 256>}, {transform_indices = @transform_2, window_bounds = array<i64: 16, 256>}]} {
    %c0 = arith.constant 0 : index
    %c0_0 = arith.constant 0 : index
    %0 = vector.load %arg1[%c0, %c0_0] : memref<16x64xf32, #tpu.memory_space<vmem>>, vector<16x64xf32>
    %c0_1 = arith.constant 0 : index
    %c0_2 = arith.constant 0 : index
    %1 = vector.load %arg2[%c0_1, %c0_2] : memref<64x256xf32, #tpu.memory_space<vmem>>, vector<64x256xf32>
    %cst = arith.constant dense<0.000000e+00> : vector<16x256xf32>
    %2 = tpu.matmul %0, %1, %cst {dimension_numbers = #tpu.dot_dimension_numbers<[1], [0], [0], [1], [0, 0, 1, 1], [], []>, precision = #tpu.contract_precision<fp32>} : vector<16x64xf32>, vector<64x256xf32>, vector<16x256xf32> -> vector<16x256xf32>
    %c0_3 = arith.constant 0 : index
    %c0_4 = arith.constant 0 : index
    %3 = vector.load %arg3[%c0_3, %c0_4] : memref<16x256xf32, #tpu.memory_space<vmem>>, vector<16x256xf32>
    tpu.vector_store %arg3[%c0_3, %c0_4], %2 {strides = array<i32>} : memref<16x256xf32, #tpu.memory_space<vmem>>, vector<16x256xf32>,
    return
  }
  func.func @transform_0(%arg0: i32) -> (i32, i32) {
    %c0_i32 = arith.constant 0 : i32
    %c0_i32_0 = arith.constant 0 : i32
    return %arg0, %c0_i32 : i32, i32
  }
  func.func @transform_1(%arg0: i32) -> (i32, i32) {
    %c0_i32 = arith.constant 0 : i32
    %c0_i32_0 = arith.constant 0 : i32
    %c0_i32_1 = arith.constant 0 : i32
    return %c0_i32, %c0_i32_0 : i32, i32
  }
  func.func @transform_2(%arg0: i32) -> (i32, i32) {
    %c0_i32 = arith.constant 0 : i32
    %c0_i32_0 = arith.constant 0 : i32
    return %arg0, %c0_i32 : i32, i32
  }
}

</mosaic_0001>

<bundles_post_ra>
// kernel: interpolate.1
= control target key start
LH: loop header
LB: loop body
LE: loop exit
PB: predicated region body
PF: predicated region fallthrough
CT: control target
= control target key end

     0   :  { %s1094_s9 = smov 0   ;;  %s1324_s0 = inlined_call_operand.vmem [shape: f32[32,64], index: 0, kind: input, shape index: {}]   ;;  %s1325_s1 = inlined_call_operand.vmem [shape: f32[64,256], index: 1, kind: input, shape index: {}]   ;;  %s1326_s2 = inlined_call_operand.vmem [shape: f32[32,256], index: 2, kind: output, shape index: {}]  }
   0x1 LB: > { %s932_s10 = sadd.s32 4294967295, %s1076_s9   ;;  %p936_p0 = scmp.ge.s32.totalorder %s1076_s9, 1  ;;  %s1076_s9 = sphi %s1094_s9, %s12_s9  }
   0x2   : > { %p113_p1 = scmp.lt.s32.totalorder %s1076_s9, 3 }
   0x4   : > { %p114_p2 = pnand %p936_p0, %p113_p1 }
   0x5   : > { %v152_v0 = vld [vmem:[%s1325_s1 + $0x8] sm:$0xff] (!%p114_p2)  ;;  %v154_v1 = vld [vmem:[%s1325_s1 + $0x18] sm:$0xff] (!%p114_p2)  ;;  %v151_v2 = vld [vmem:[%s1325_s1] sm:$0xff] (!%p114_p2)  ;;  %s1111_s17 = sshll.u32 (!%p114_p2), %s932_s10, 1  ;;  %v1078_v9 = vmov (!%p114_p2), 0.0   ;;  %vm167_vm0 = vcmask (!%p114_p2), 523264  }
   0x6   : > { %117 = sbr.rel (%p114_p2) target bundleno = 280 (0x118), region = 28  ;;  %v174_v3 = vand.u32 (!%p114_p2), 4294901760, %v152_v0  ;;  %v178_v4 = vand.u32 (!%p114_p2), 4294901760, %v154_v1  ;;  %v153_v5 = vld [vmem:[%s1325_s1 + $0x10] sm:$0xff] (!%p114_p2)  ;;  %v176_v6 = vand.u32 (!%p114_p2), 4294901760, %v151_v2  ;;  %v156_v7 = vld [vmem:[%s1325_s1 + $0x28] sm:$0xff] (!%p114_p2)  ;;  %254 = vmatprep.mubr.f32.mxu1 (!%p114_p2), %v1078_v9  ;;  %629 = vmatprep.mubr.f32.mxu0 (!%p114_p2), %v1078_v9 }
   0x7   : > { %v158_v8 = vld [vmem:[%s1325_s1 + $0x38] sm:$0xff] (!%p114_p2)  ;;  %v180_v10 = vand.u32 (!%p114_p2), 4294901760, %v153_v5  ;;  %v182_v11 = vand.u32 (!%p114_p2), 4294901760, %v156_v7  ;;  %v155_v13 = vld [vmem:[%s1325_s1 + $0x20] sm:$0xff] (!%p114_p2)  ;;  %v157_v14 = vld [vmem:[%s1325_s1 + $0x30] sm:$0xff] (!%p114_p2)  ;;  %p137_p3 = scmp.lt.s32.totalorder (!%p114_p2), %s1111_s17, 3 }
   0x8   : > { %v186_v12 = vand.u32 (!%p114_p2), 4294901760, %v158_v8  ;;  %v160_v15 = vld [vmem:[%s1325_s1 + $0x48] sm:$0xff] (!%p114_p2)  ;;  %v1133_v16 = vpack.c.bf16 (!%p114_p2), %v178_v4, %v174_v3  ;;  %v1135_v17 = vsub.f32 (!%p114_p2), %v152_v0, %v174_v3  ;;  %v1137_v18 = vsub.f32 (!%p114_p2), %v154_v1, %v178_v4  ;;  %v162_v19 = vld [vmem:[%s1325_s1 + $0x58] sm:$0xff] (!%p114_p2)  ;;  %v159_v20 = vld [vmem:[%s1325_s1 + $0x40] sm:$0xff] (!%p114_p2) }
   0x9   : > { %v161_v21 = vld [vmem:[%s1325_s1 + $0x50] sm:$0xff] (!%p114_p2)  ;;  %v1149_v22 = vpack.c.bf16 (!%p114_p2), %v180_v10, %v176_v6  ;;  %v1151_v23 = vsub.f32 (!%p114_p2), %v151_v2, %v176_v6  ;;  %v1153_v24 = vsub.f32 (!%p114_p2), %v153_v5, %v180_v10  ;;  %v164_v26 = vld [vmem:[%s1325_s1 + $0x68] sm:$0xff] (!%p114_p2)  ;;  %v166_v27 = vld [vmem:[%s1325_s1 + $0x78] sm:$0xff] (!%p114_p2)  ;;  %v1165_v28 = vsub.f32 (!%p114_p2), %v156_v7, %v182_v11 }
   0xa   : > { %v1155_v25 = vpack.c.bf16 (!%p114_p2), %v186_v12, %v182_v11  ;;  %946 = vmatprep.subr.bf16.mxu1 (!%p114_p2), %v1133_v16  ;;  %994 = vmatprep.subr.bf16.mxu0 (!%p114_p2), %v1133_v16  ;;  %v184_v29 = vand.u32 (!%p114_p2), 4294901760, %v155_v13  ;;  %v188_v30 = vand.u32 (!%p114_p2), 4294901760, %v157_v14  ;;  %v190_v31 = vand.u32 (!%p114_p2), 4294901760, %v160_v15  ;;  %v163_v40 = vld [vmem:[%s1325_s1 + $0x60] sm:$0xff] (!%p114_p2)  ;;  %v165_v41 = vld [vmem:[%s1325_s1 + $0x70] sm:$0xff] (!%p114_p2) }
   0xb   : > { %948 = vmatpush1.bf16.msra.mxu1 (!%p114_p2), %v1149_v22  ;;  %996 = vmatpush1.bf16.msra.mxu0 (!%p114_p2), %v1149_v22  ;;  %v194_v32 = vand.u32 (!%p114_p2), 4294901760, %v162_v19  ;;  %v192_v33 = vand.u32 (!%p114_p2), 4294901760, %v159_v20  ;;  %v196_v34 = vand.u32 (!%p114_p2), 4294901760, %v161_v21  ;;  %v198_v35 = vand.u32 (!%p114_p2), 4294901760, %v164_v26 }
   0xc   : > { %950 = vmatprep.subr.bf16.mxu1 (!%p114_p2), %v1155_v25  ;;  %v1175_v36 = vsub.f32 (!%p114_p2), %v158_v8, %v186_v12  ;;  %998 = vmatprep.subr.bf16.mxu0 (!%p114_p2), %v1155_v25  ;;  %v1178_v37 = vpack.c.bf16 (!%p114_p2), %v188_v30, %v184_v29  ;;  %v1180_v38 = vsub.f32 (!%p114_p2), %v155_v13, %v184_v29  ;;  %v202_v39 = vand.u32 (!%p114_p2), 4294901760, %v166_v27 }
   0xd   : > { %s1328_s17 = smov (!%p137_p3, %s1111_s17), 3  ;;  %v1189_v42 = vsub.f32 %v157_v14, %v188_v30  ;;  %v1191_v43 = vpack.c.bf16 %v194_v32, %v190_v31  ;;  %v1193_v44 = vsub.f32 %v160_v15, %v190_v31  ;;  %v1195_v45 = vsub.f32 %v162_v19, %v194_v32 }
   0xe   : > { %s938_s18 = sshll.u32 %s1328_s17, 3  ;;  %v1202_v46 = vpack.c.bf16 %v196_v34, %v192_v33  ;;  %v1204_v47 = vsub.f32 %v159_v20, %v192_v33  ;;  %v1206_v48 = vsub.f32 %v161_v21, %v196_v34  ;;  %v1208_v49 = vpack.c.bf16 %v202_v39, %v198_v35  ;;  %s944_s22 = sshll.u32 %s1328_s17, 4 }
   0xf   : > { %s1200_s21 = scalar_lea.vmem %s1324_s0, %s938_s18  ;;  %952 = vmatpush1.bf16.msra.mxu1 %v1178_v37  ;;  %1000 = vmatpush1.bf16.msra.mxu0 %v1178_v37  ;;  %v1213_v51 = vsub.f32 %v164_v26, %v198_v35  ;;  %v200_v52 = vand.u32 4294901760, %v163_v40  ;;  %v204_v53 = vand.u32 4294901760, %v165_v41  ;;  %v279_v54 = vand.u32 4294901760, %v1135_v17  ;;  %s147_s25 = scalar_lea.vmem %s1326_s2, %s944_s22 }
  0x10   : > { %v149_v50 = vld [vmem:[%s1200_s21] sm:$0xff]  ;;  %954 = vmatprep.subr.bf16.mxu1 %v1191_v43  ;;  %1002 = vmatprep.subr.bf16.mxu0 %v1191_v43  ;;  %v291_v55 = vand.u32 4294901760, %v1137_v18  ;;  %v285_v57 = vand.u32 4294901760, %v1151_v23  ;;  %v297_v58 = vand.u32 4294901760, %v1153_v24  ;;  %v1222_v59 = vsub.f32 %v166_v27, %v202_v39 }
  0x11   : > { %v169_v56 = vsel %vm167_vm0, %v149_v50, 0  ;;  %v1224_v60 = vpack.c.bf16 %v204_v53, %v200_v52  ;;  %v1226_v61 = vsub.f32 %v163_v40, %v200_v52  ;;  %v280_v62 = vsub.f32 %v1135_v17, %v279_v54 }
  0x12   : > { %v1229_v63 = vsub.f32 %v165_v41, %v204_v53  ;;  %v292_v0 = vsub.f32 %v1137_v18, %v291_v55  ;;  %v1232_v1 = vand.u32 4294901760, %v169_v56  ;;  %v286_v2 = vsub.f32 %v1151_v23, %v285_v57 }
  0x13   : > { %956 = vmatpush1.bf16.msra.mxu1 %v1202_v46  ;;  %1004 = vmatpush1.bf16.msra.mxu0 %v1202_v46  ;;  %v281_v3 = vand.u32 4294901760, %v280_v62  ;;  %v1009_v4 = vpack.c.bf16 %v291_v55, %v279_v54  ;;  %v298_v5 = vsub.f32 %v1153_v24, %v297_v58  ;;  %v303_v6 = vand.u32 4294901760, %v1165_v28 }
  0x14   : > { %958 = vmatprep.subr.bf16.mxu1 %v1208_v49  ;;  %1006 = vmatprep.subr.bf16.mxu0 %v1208_v49  ;;  %v293_v7 = vand.u32 4294901760, %v292_v0  ;;  %v1242_v8 = vsub.f32 %v169_v56, %v1232_v1  ;;  %v287_v10 = vand.u32 4294901760, %v286_v2  ;;  %v315_v11 = vand.u32 4294901760, %v1175_v36  ;;  %v150_v56 = vld [vmem:[%s1200_s21 + $0x8] sm:$0xff] }
  0x15   : > { %v299_v12 = vand.u32 4294901760, %v298_v5  ;;  %v304_v13 = vsub.f32 %v1165_v28, %v303_v6  ;;  %v309_v14 = vand.u32 4294901760, %v1180_v38  ;;  %v321_v15 = vand.u32 4294901760, %v1189_v42 }
  0x16   : > { %v961_v19 = vpack.c.bf16 %v293_v7, %v281_v3  ;;  %v257_v20 = vand.u32 4294901760, %v1242_v8  ;;  %v1011_v21 = vpack.c.bf16 %v297_v58, %v285_v57  ;;  %v316_v26 = vsub.f32 %v1175_v36, %v315_v11 }
  0x17   : > { %960 = vmatpush1.bf16.msra.mxu1 %v1224_v60  ;;  %1008 = vmatpush1.bf16.msra.mxu0 %v1224_v60  ;;  %v305_v27 = vand.u32 4294901760, %v304_v13  ;;  %v1013_v29 = vpack.c.bf16 %v315_v11, %v303_v6  ;;  %v310_v30 = vsub.f32 %v1180_v38, %v309_v14  ;;  %v322_v31 = vsub.f32 %v1189_v42, %v321_v15 }
  0x18   : > { %962 = vmatprep.subr.bf16.mxu1 %v961_v19  ;;  %1010 = vmatprep.subr.bf16.mxu0 %v1009_v4  ;;  %v258_v32 = vsub.f32 %v1242_v8, %v257_v20  ;;  %v963_v33 = vpack.c.bf16 %v299_v12, %v287_v10  ;;  %v317_v34 = vand.u32 4294901760, %v316_v26  ;;  %v327_v35 = vand.u32 4294901760, %v1193_v44 }
  0x19   : > { %v311_v39 = vand.u32 4294901760, %v310_v30  ;;  %v323_v40 = vand.u32 4294901760, %v322_v31  ;;  %v339_v41 = vand.u32 4294901760, %v1195_v45  ;;  %v333_v50 = vand.u32 4294901760, %v1204_v47 }
  0x1a   : > { %v259_v52 = vand.u32 4294901760, %v258_v32  ;;  %633 = vmatmul.mubr.f32.vlgmr.msra.gmra.mrb[0].mxu0 %v257_v20  ;;  %v965_v53 = vpack.c.bf16 %v317_v34, %v305_v27  ;;  %v328_v54 = vsub.f32 %v1193_v44, %v327_v35  ;;  %v345_v55 = vand.u32 4294901760, %v1206_v48 }
  0x1b   : > { %1012 = vmatpush1.bf16.msra.mxu0 %v1011_v21  ;;  %v967_v57 = vpack.c.bf16 %v323_v40, %v311_v39  ;;  %v1015_v58 = vpack.c.bf16 %v321_v15, %v309_v14  ;;  %v340_v62 = vsub.f32 %v1195_v45, %v339_v41  ;;  %v334_v0 = vsub.f32 %v1204_v47, %v333_v50 }
  0x1c   : > { %260 = vmatmul.mubr.f32.vlgmr.msra.gmra.mrb[0].mxu1 %v259_v52  ;;  %1014 = vmatprep.subr.bf16.mxu0 %v1013_v29  ;;  %v329_v2 = vand.u32 4294901760, %v328_v54  ;;  %v1017_v3 = vpack.c.bf16 %v339_v41, %v327_v35  ;;  %v346_v4 = vsub.f32 %v1206_v48, %v345_v55  ;;  %v351_v5 = vand.u32 4294901760, %v1213_v51 }
  0x1d   : > { %964 = vmatpush1.bf16.msra.mxu1 %v963_v33  ;;  %v341_v6 = vand.u32 4294901760, %v340_v62  ;;  %v335_v7 = vand.u32 4294901760, %v334_v0  ;;  %265 = vmatprep.mubr.f32.mxu1 %v1078_v9  ;;  %v363_v10 = vand.u32 4294901760, %v1222_v59  ;;  %v172_v11 = vsel %vm167_vm0, %v150_v56, 0 }
  0x1e   : > { %966 = vmatprep.subr.bf16.mxu1 %v965_v53  ;;  %v347_v12 = vand.u32 4294901760, %v346_v4  ;;  %v352_v13 = vsub.f32 %v1213_v51, %v351_v5  ;;  %638 = vmatprep.mubr.f32.mxu0 %v1078_v9  ;;  %v1270_v14 = vand.u32 4294901760, %v172_v11  ;;  %v357_v15 = vand.u32 4294901760, %v1226_v61 }
  0x1f   : > { %1016 = vmatpush1.bf16.msra.mxu0 %v1015_v58  ;;  %v969_v19 = vpack.c.bf16 %v341_v6, %v329_v2  ;;  %v1019_v20 = vpack.c.bf16 %v345_v55, %v333_v50  ;;  %v364_v21 = vsub.f32 %v1222_v59, %v363_v10  ;;  %v369_v26 = vand.u32 4294901760, %v1229_v63 }
  0x20   : > { %1018 = vmatprep.subr.bf16.mxu0 %v1017_v3  ;;  %v353_v27 = vand.u32 4294901760, %v352_v13  ;;  %v1021_v29 = vpack.c.bf16 %v363_v10, %v351_v5  ;;  %v267_v30 = vsub.f32 %v172_v11, %v1270_v14  ;;  %v358_v31 = vsub.f32 %v1226_v61, %v357_v15 }
  0x21   : > { %968 = vmatpush1.bf16.msra.mxu1 %v967_v57  ;;  %v971_v32 = vpack.c.bf16 %v347_v12, %v335_v7  ;;  %v365_v33 = vand.u32 4294901760, %v364_v21  ;;  %v370_v34 = vsub.f32 %v1229_v63, %v369_v26  ;;  %v1023_v50 = vpack.c.bf16 %v369_v26, %v357_v15 }
  0x22   : > { %970 = vmatprep.subr.bf16.mxu1 %v969_v19  ;;  %v268_v35 = vand.u32 4294901760, %v267_v30  ;;  %v359_v39 = vand.u32 4294901760, %v358_v31  ;;  %v977_v55 = vpack.c.bf16 %v1137_v18, %v1135_v17  ;;  %v979_v56 = vpack.c.bf16 %v1153_v24, %v1151_v23 }
  0x23   : > { %1020 = vmatpush1.bf16.msra.mxu0 %v1019_v20  ;;  %v973_v40 = vpack.c.bf16 %v365_v33, %v353_v27  ;;  %v371_v41 = vand.u32 4294901760, %v370_v34  ;;  %v981_v57 = vpack.c.bf16 %v1175_v36, %v1165_v28  ;;  %v985_v17 = vpack.c.bf16 %v1195_v45, %v1193_v44 }
  0x24   : > { %1022 = vmatprep.subr.bf16.mxu0 %v1021_v29  ;;  %v269_v52 = vsub.f32 %v267_v30, %v268_v35  ;;  %642 = vmatmul.mubr.f32.gmra.mrb[2].mxu0 %v268_v35  ;;  %v987_v18 = vpack.c.bf16 %v1206_v48, %v1204_v47  ;;  %v991_v23 = vpack.c.bf16 %v1229_v63, %v1226_v61 }
  0x25   : > { %972 = vmatpush1.bf16.msra.mxu1 %v971_v32  ;;  %v975_v53 = vpack.c.bf16 %v371_v41, %v359_v39  ;;  %760 = vmatprep.mubr.f32.mxu0 %v1078_v9 }
  0x26   : > { %974 = vmatprep.subr.bf16.mxu1 %v973_v40  ;;  %v270_v54 = vand.u32 4294901760, %v269_v52 }
  0x27   : > { %1024 = vmatpush1.bf16.msra.mxu0 %v1023_v50 }
  0x28   : > { %271 = vmatmul.mubr.f32.gmra.mrb[2].mxu1 %v270_v54  ;;  %1026 = vmatprep.subr.bf16.mxu0 %v1133_v16  ;;  %v983_v16 = vpack.c.bf16 %v1189_v42, %v1180_v38 }
  0x29   : > { %976 = vmatpush1.bf16.msra.mxu1 %v975_v53  ;;  %421 = vmatprep.mubr.f32.mxu1 %v1078_v9 }
  0x2a   : > { %978 = vmatprep.subr.bf16.mxu1 %v977_v55  ;;  %762 = vmatmul.mubr.f32.vlgmr.msra.gmra.mrb[0].mxu0 %v1232_v1 }
  0x2b   : > { %1028 = vmatpush1.bf16.msra.mxu0 %v1149_v22  ;;  %767 = vmatprep.mubr.f32.mxu0 %v1078_v9  ;;  %v989_v22 = vpack.c.bf16 %v1222_v59, %v1213_v51 }
  0x2c   : > { %423 = vmatmul.mubr.f32.vlgmr.msra.gmra.mrb[0].mxu1 %v1232_v1  ;;  %1030 = vmatprep.subr.bf16.mxu0 %v1155_v25 }
  0x2d   : > { %980 = vmatpush1.bf16.msra.mxu1 %v979_v56  ;;  %428 = vmatprep.mubr.f32.mxu1 %v1078_v9 }
  0x2e   : > { %982 = vmatprep.subr.bf16.mxu1 %v981_v57  ;;  %769 = vmatmul.mubr.f32.gmra.mrb[2].mxu0 %v1270_v14 }
  0x2f   : > { %1032 = vmatpush1.bf16.msra.mxu0 %v1178_v37  ;;  %855 = vmatprep.mubr.f32.mxu0 %v1078_v9 }
  0x30   : > { %1034 = vmatprep.subr.bf16.mxu0 %v1191_v43  ;;  %430 = vmatmul.mubr.f32.gmra.mrb[2].mxu1 %v1270_v14 }
  0x31   : > { %984 = vmatpush1.bf16.msra.mxu1 %v983_v16  ;;  %532 = vmatprep.mubr.f32.mxu1 %v1078_v9 }
  0x32   : > { %986 = vmatprep.subr.bf16.mxu1 %v985_v17 }
  0x33   : > { %1036 = vmatpush1.bf16.msra.mxu0 %v1202_v46 }
  0x34   : > { %1038 = vmatprep.subr.bf16.mxu0 %v1208_v49 }
  0x35   : > { %988 = vmatpush1.bf16.msra.mxu1 %v987_v18 }
  0x36   : > { %990 = vmatprep.subr.bf16.mxu1 %v989_v22 }
  0x37   : > { %1040 = vmatpush1.bf16.msra.mxu0 %v1224_v60 }
  0x39   : > { %992 = vmatpush1.bf16.msra.mxu1 %v991_v23 }
  0x3a   : > { %857 = vmatmul.mubr.f32.vlgmr.msra.gmra.mrb[0].mxu0 %v1232_v1 }
  0x3b   : > { %862 = vmatprep.mubr.f32.mxu0 %v1078_v9 }
  0x3c   : > { %535 = vmatmul.mubr.f32.vlgmr.msra.gmra.mrb[0].mxu1 %v1242_v8 }
  0x3d   : > { %540 = vmatprep.mubr.f32.mxu1 %v1078_v9 }
  0x3e   : > { %864 = vmatmul.mubr.f32.gmra.mrb[2].mxu0 %v1270_v14 }
  0x40   : > { %543 = vmatmul.mubr.f32.gmra.mrb[2].mxu1 %v267_v30 }
 0x10d   : > { %v858_v24 = vpop.f32.mrb[0].mxu0 }
 0x10e   : > { %v860_v25 = vpop.f32.mrb[1].mxu0 }
 0x10f   : > { %v536_v28 = vpop.f32.mrb[0].mxu1 }
 0x110   : > { %v1041_v36 = vadd.f32 %v858_v24, %v536_v28  ;;  %v538_v37 = vpop.f32.mrb[1].mxu1 }
 0x111   : > { %v1042_v38 = vadd.f32 %v860_v25, %v538_v37  ;;  %v865_v42 = vpop.f32.mrb[2].mxu0 }
 0x112   : > { %870 = vst [vmem:[%s147_s25] sm:$0xff] %v1041_v36  ;;  %v867_v43 = vpop.f32.mrb[3].mxu0 }
 0x113   : > { %871 = vst [vmem:[%s147_s25 + $0x8] sm:$0xff] %v1042_v38  ;;  %v544_v44 = vpop.f32.mrb[2].mxu1 }
 0x114   : > { %v1043_v9 = vadd.f32 %v865_v42, %v544_v44  ;;  %v546_v45 = vpop.f32.mrb[3].mxu1 }
 0x115   : > { %v1044_v46 = vadd.f32 %v867_v43, %v546_v45 }
 0x116   : > { %872 = vst [vmem:[%s147_s25 + $0x10] sm:$0xff] %v1043_v9 }
 0x117   : > { %873 = vst [vmem:[%s147_s25 + $0x18] sm:$0xff] %v1044_v46 }
 0x118 PF: > { %s12_s9 = sadd.s32 1, %s1076_s9  }
 0x119   : > { %p9_p4 = scmp.ge.s32.totalorder %s12_s9, 4  }
 0x11b   :  { %11 = sbr.rel (!%p9_p4) target bundleno = 1 (0x1), region = 58 }

</bundles_post_ra>
